<compile_context>
chip_gen: v6e
topology: v6e:2x2x1
jax: 0.10.0
libtpu: 0.0.40
codegen_flags: <defaults>
</compile_context>

<pallas_src>
import jax
import jax.numpy as jnp
import numpy as np
from jax.experimental import pallas as pl
from jax.experimental.pallas import tpu as pltpu


# ----------------------------------------------------------------------------
# Fused kernel: conv1 + BN + ReLU -> depthwise 3x3/s2 + BN + ReLU
#               -> 1x1 conv + BN + ReLU, one grid step per batch element.
# All stages are plain MXU matmuls on lane-dense operands; x1 stays in VMEM.
# ----------------------------------------------------------------------------
def _downsample_kernel(x_ref, l1_ref, a1_ref, t1_ref, l2_ref, b2_ref, t2_ref,
                       wpw_ref, t3_ref, o1_ref, o2_ref):
    f32 = jnp.float32
    xs = x_ref[0]                                                   # (H, W)

    # -- stage 1: Conv2d(1,C1,3,s2) + bias + BN1 + ReLU -----------------------
    # x1[h1, w1*C1+c] = sum_di (L1_di @ xs @ A1_di)[h1, w1*C1+c]
    x1 = None
    for di in range(3):
        rows = jnp.dot(l1_ref[di], xs, preferred_element_type=f32)        # (H1, W)
        term = jnp.dot(rows, a1_ref[di], preferred_element_type=f32)      # (H1, W1*C1)
        x1 = term if x1 is None else x1 + term
    x1 = jnp.maximum(x1 + t1_ref[...], 0.0)                               # (H1, W1*C1)
    o1_ref[0] = x1.astype(o1_ref.dtype)

    # -- stage 2a: depthwise Conv2d(C1,C1,3,s2,p1,groups=C1) + BN2 + ReLU ------
    # Zero padding is encoded in L2/B2 (out-of-range taps have no entries).
    acc = None
    for di in range(3):
        rows = jnp.dot(l2_ref[di], x1, preferred_element_type=f32)        # (H2, W1*C1)
        term = jnp.dot(rows, b2_ref[di], preferred_element_type=f32)      # (H2, W2*C1)
        acc = term if acc is None else acc + term
    a = jnp.maximum(acc + t2_ref[...], 0.0)                               # (H2, W2*C1)

    # -- stage 2b: Conv2d(C1,C2,1) + BN3 + ReLU (block-diagonal matmul) --------
    y = jnp.dot(a, wpw_ref[...], preferred_element_type=f32)              # (H2, W2*C2)
    o2_ref[0] = jnp.maximum(y + t3_ref[...], 0.0).astype(o2_ref.dtype)


def _downsample_call(xs, l1, a1, t1d, l2, b2, t2d, wpw, t3d):
    N, H, W = xs.shape
    H1 = l1.shape[1]
    WC1 = a1.shape[2]            # W1 * C1
    H2 = l2.shape[1]
    WC1b = b2.shape[2]           # W2 * C1
    WC2 = wpw.shape[1]           # W2 * C2
    return pl.pallas_call(
        _downsample_kernel,
        out_shape=(jax.ShapeDtypeStruct((N, H1, WC1), jnp.float32),
                   jax.ShapeDtypeStruct((N, H2, WC2), jnp.float32)),
        grid=(N,),
        in_specs=[
            pl.BlockSpec((1, H, W), lambda n: (n, 0, 0)),        # raw image
            pl.BlockSpec((3, H1, H), lambda n: (0, 0, 0)),       # conv1 row selectors
            pl.BlockSpec((3, W, WC1), lambda n: (0, 0, 0)),      # conv1 col-tap weights
            pl.BlockSpec((1, WC1), lambda n: (0, 0)),            # conv1 bias + BN1 shift
            pl.BlockSpec((3, H2, H1), lambda n: (0, 0, 0)),      # dw row selectors
            pl.BlockSpec((3, WC1, WC1b), lambda n: (0, 0, 0)),   # dw col-tap weights
            pl.BlockSpec((1, WC1b), lambda n: (0, 0)),           # BN2 shift
            pl.BlockSpec((WC1b, WC2), lambda n: (0, 0)),         # block-diag 1x1 conv
            pl.BlockSpec((1, WC2), lambda n: (0, 0)),            # BN3 shift
        ],
        out_specs=(
            pl.BlockSpec((1, H1, WC1), lambda n: (n, 0, 0)),     # x1 lane-dense
            pl.BlockSpec((1, H2, WC2), lambda n: (n, 0, 0)),     # x2 lane-dense
        ),
        compiler_params=pltpu.CompilerParams(
            dimension_semantics=("parallel",)),                  # v7x: split batch
    )(xs, l1, a1, t1d, l2, b2, t2d, wpw, t3d)


# ----------------------------------------------------------------------------
# Parameters (deterministic, synthetic) and forward wrapper
# ----------------------------------------------------------------------------
def init_params(key, c1=16, c2=32):
    ks = jax.random.split(key, 17)
    f32 = jnp.float32
    return {
        "w1": 0.3 * jax.random.normal(ks[0], (c1, 1, 3, 3), f32),
        "b1": 0.1 * jax.random.normal(ks[1], (c1,), f32),
        "bn1_gamma": 1.0 + 0.1 * jax.random.normal(ks[2], (c1,), f32),
        "bn1_beta": 0.1 * jax.random.normal(ks[3], (c1,), f32),
        "bn1_mean": 0.05 * jax.random.normal(ks[4], (c1,), f32),
        "bn1_var": 1.0 + 0.1 * jnp.abs(jax.random.normal(ks[5], (c1,), f32)),
        "w_dw": 0.3 * jax.random.normal(ks[6], (c1, 1, 3, 3), f32),
        "bn2_gamma": 1.0 + 0.1 * jax.random.normal(ks[7], (c1,), f32),
        "bn2_beta": 0.1 * jax.random.normal(ks[8], (c1,), f32),
        "bn2_mean": 0.05 * jax.random.normal(ks[9], (c1,), f32),
        "bn2_var": 1.0 + 0.1 * jnp.abs(jax.random.normal(ks[10], (c1,), f32)),
        "w_pw": 0.3 * jax.random.normal(ks[11], (c2, c1, 1, 1), f32),
        "bn3_gamma": 1.0 + 0.1 * jax.random.normal(ks[12], (c2,), f32),
        "bn3_beta": 0.1 * jax.random.normal(ks[13], (c2,), f32),
        "bn3_mean": 0.05 * jax.random.normal(ks[14], (c2,), f32),
        "bn3_var": 1.0 + 0.1 * jnp.abs(jax.random.normal(ks[15], (c2,), f32)),
    }


def _fold_bn(gamma, beta, mean, var, eps=1e-5):
    scale = gamma / jnp.sqrt(var + eps)
    return scale, beta - mean * scale


def downsample_forward(x, p, eps=1e-5):
    """x: (N, 1, H, W) float32 NCHW.  Returns (x1, x2) in NCHW like PyTorch."""
    N, _, H, W = x.shape
    C1 = p["w1"].shape[0]
    C2 = p["w_pw"].shape[0]
    H1 = (H - 3) // 2 + 1                       # conv1: k=3, s=2, p=0
    W1 = (W - 3) // 2 + 1
    H2 = (H1 - 1) // 2 + 1                      # dw:    k=3, s=2, p=1
    W2 = (W1 - 1) // 2 + 1
    f32 = jnp.float32

    s1, sh1 = _fold_bn(p["bn1_gamma"], p["bn1_beta"], p["bn1_mean"], p["bn1_var"], eps)
    s2, sh2 = _fold_bn(p["bn2_gamma"], p["bn2_beta"], p["bn2_mean"], p["bn2_var"], eps)
    s3, sh3 = _fold_bn(p["bn3_gamma"], p["bn3_beta"], p["bn3_mean"], p["bn3_var"], eps)

    # --- static 0/1 selector tensors (shape-only, numpy -> baked-in constants) ---
    # conv1 (no padding): output (h1, w1) reads input (2*h1+di, 2*w1+dj)
    l1 = np.asarray(np.arange(H)[None, None, :] ==
                    2 * np.arange(H1)[None, :, None] + np.arange(3)[:, None, None],
                    dtype=np.float32)                                    # (3, H1, H)
    sel1 = np.asarray(np.arange(W)[:, None, None] ==
                      2 * np.arange(W1)[None, :, None] + np.arange(3)[None, None, :],
                      dtype=np.float32)                                  # (W, W1, 3)
    # depthwise (padding 1): reads x1 at (2*h2+di-1, 2*w2+dj-1); out-of-range
    # taps simply have no selector entry, which implements the zero padding.
    l2 = np.asarray(np.arange(H1)[None, None, :] ==
                    2 * np.arange(H2)[None, :, None] + np.arange(3)[:, None, None] - 1,
                    dtype=np.float32)                                    # (3, H2, H1)
    sel2 = np.asarray(np.arange(W1)[:, None, None] ==
                      2 * np.arange(W2)[None, :, None] + np.arange(3)[None, None, :] - 1,
                      dtype=np.float32)                                  # (W1, W2, 3)

    # --- fold BN scales into conv weights and build the tap matrices ---
    w1f = p["w1"].reshape(C1, 9).T * s1[None, :]                         # (9, C1)
    a1 = jnp.einsum("kwj,ijc->ikwc", jnp.asarray(sel1),
                    w1f.reshape(3, 3, C1)).reshape(3, W, W1 * C1)
    t1d = jnp.tile(p["b1"] * s1 + sh1, W1).reshape(1, W1 * C1)

    wdwf = p["w_dw"].reshape(C1, 9).T * s2[None, :]                      # (9, C1)
    b2core = jnp.einsum("kwj,ijc->ikwc", jnp.asarray(sel2),
                        wdwf.reshape(3, 3, C1))                          # (3, W1, W2, C1)
    b2 = jnp.einsum("ikwc,dc->ikdwc", b2core,
                    jnp.eye(C1, dtype=f32)).reshape(3, W1 * C1, W2 * C1)
    t2d = jnp.tile(sh2, W2).reshape(1, W2 * C1)

    wpwf = p["w_pw"][:, :, 0, 0].T * s3[None, :]                         # (C1, C2)
    wpw_blk = jnp.einsum("ab,cd->acbd", jnp.eye(W2, dtype=f32),
                         wpwf).reshape(W2 * C1, W2 * C2)
    t3d = jnp.tile(sh3, W2).reshape(1, W2 * C2)

    o1, o2 = _downsample_call(x[:, 0], jnp.asarray(l1), a1, t1d,
                              jnp.asarray(l2), b2, t2d, wpw_blk, t3d)

    # lane-dense (N, H, W*C) -> NCHW: one transpose per output (only host glue left)
    x1 = o1.reshape(N, H1, W1, C1).transpose(0, 3, 1, 2)
    x2 = o2.reshape(N, H2, W2, C2).transpose(0, 3, 1, 2)
    return x1, x2


# ----------------------------------------------------------------------------
# Pure-JAX reference (for correctness check)
# ----------------------------------------------------------------------------
def reference_forward(x, p, eps=1e-5):
    prec = jax.lax.Precision.HIGHEST

    def bn_relu(y, g, b, m, v):
        s = g / jnp.sqrt(v + eps)
        return jnp.maximum(
            y * s[None, :, None, None] + (b - m * s)[None, :, None, None], 0.0)

    dn = ("NCHW", "OIHW", "NCHW")
    y = jax.lax.conv_general_dilated(x, p["w1"], (2, 2), "VALID",
                                     dimension_numbers=dn, precision=prec)
    y = y + p["b1"][None, :, None, None]
    x1 = bn_relu(y, p["bn1_gamma"], p["bn1_beta"], p["bn1_mean"], p["bn1_var"])
    a = jax.lax.conv_general_dilated(x1, p["w_dw"], (2, 2), ((1, 1), (1, 1)),
                                     dimension_numbers=dn,
                                     feature_group_count=p["w_dw"].shape[0],
                                     precision=prec)
    a = bn_relu(a, p["bn2_gamma"], p["bn2_beta"], p["bn2_mean"], p["bn2_var"])
    z = jax.lax.conv_general_dilated(a, p["w_pw"], (1, 1), "VALID",
                                     dimension_numbers=dn, precision=prec)
    x2 = bn_relu(z, p["bn3_gamma"], p["bn3_beta"], p["bn3_mean"], p["bn3_var"])
    return x1, x2


if __name__ == "__main__":
    key = jax.random.PRNGKey(0)
    kx, kp = jax.random.split(key)
    # NCHW input with 1 channel; H=W=33 -> x1: (2,16,16,16), x2: (2,32,8,8)
    x = jax.random.normal(kx, (2, 1, 33, 33), jnp.float32)
    params = init_params(kp)

    fwd = jax.jit(downsample_forward)
    x1, x2 = fwd(x, params)
    jax.block_until_ready((x1, x2))

    r1, r2 = reference_forward(x, params)
    assert x1.shape == (2, 16, 16, 16), x1.shape
    assert x2.shape == (2, 32, 8, 8), x2.shape
    assert jnp.allclose(x1, r1, atol=1e-4, rtol=1e-4), \
        float(jnp.max(jnp.abs(x1 - r1)))
    assert jnp.allclose(x2, r2, atol=1e-4, rtol=1e-4), \
        float(jnp.max(jnp.abs(x2 - r2)))
    print("KERNEL_OK")
</pallas_src>

<mosaic_0001>
module attributes {stable_mosaic.version = 11 : i64} {
  func.func @_downsample_kernel(%arg0: i32, %arg1: memref<1x33x33xf32, #tpu.memory_space<vmem>>, %arg2: memref<3x16x33xf32, #tpu.memory_space<vmem>>, %arg3: memref<3x33x256xf32, #tpu.memory_space<vmem>>, %arg4: memref<1x256xf32, #tpu.memory_space<vmem>>, %arg5: memref<3x8x16xf32, #tpu.memory_space<vmem>>, %arg6: memref<3x256x128xf32, #tpu.memory_space<vmem>>, %arg7: memref<1x128xf32, #tpu.memory_space<vmem>>, %arg8: memref<128x256xf32, #tpu.memory_space<vmem>>, %arg9: memref<1x256xf32, #tpu.memory_space<vmem>>, %arg10: memref<1x16x256xf32, #tpu.memory_space<vmem>>, %arg11: memref<1x8x256xf32, #tpu.memory_space<vmem>>) attributes {dimension_semantics = [#tpu.dimension_semantics<parallel>], iteration_bounds = array<i64: 2>, scalar_prefetch = 0 : i64, scratch_operands = 0 : i64, tpu.core_type = #tpu.core_type<tc>, window_params = [{transform_indices = @transform_0, window_bounds = array<i64: 1, 33, 33>}, {pipeline_mode = #tpu.pipeline_mode<synchronous>, transform_indices = @transform_1, window_bounds = array<i64: 3, 16, 33>}, {pipeline_mode = #tpu.pipeline_mode<synchronous>, transform_indices = @transform_2, window_bounds = array<i64: 3, 33, 256>}, {pipeline_mode = #tpu.pipeline_mode<synchronous>, transform_indices = @transform_3, window_bounds = array<i64: 1, 256>}, {pipeline_mode = #tpu.pipeline_mode<synchronous>, transform_indices = @transform_4, window_bounds = array<i64: 3, 8, 16>}, {pipeline_mode = #tpu.pipeline_mode<synchronous>, transform_indices = @transform_5, window_bounds = array<i64: 3, 256, 128>}, {pipeline_mode = #tpu.pipeline_mode<synchronous>, transform_indices = @transform_6, window_bounds = array<i64: 1, 128>}, {pipeline_mode = #tpu.pipeline_mode<synchronous>, transform_indices = @transform_7, window_bounds = array<i64: 128, 256>}, {pipeline_mode = #tpu.pipeline_mode<synchronous>, transform_indices = @transform_8, window_bounds = array<i64: 1, 256>}, {transform_indices = @transform_9, window_bounds = array<i64: 1, 16, 256>}, {transform_indices = @transform_10, window_bounds = array<i64: 1, 8, 256>}]} {
    %c0 = arith.constant 0 : index
    %c0_0 = arith.constant 0 : index
    %c0_1 = arith.constant 0 : index
    %0 = vector.load %arg1[%c0, %c0_0, %c0_1] : memref<1x33x33xf32, #tpu.memory_space<vmem>>, vector<1x33x33xf32>
    %1 = vector.shape_cast %0 : vector<1x33x33xf32> to vector<33x33xf32>
    %c0_2 = arith.constant 0 : index
    %c0_3 = arith.constant 0 : index
    %c0_4 = arith.constant 0 : index
    %2 = vector.load %arg2[%c0_2, %c0_3, %c0_4] : memref<3x16x33xf32, #tpu.memory_space<vmem>>, vector<1x16x33xf32>
    %3 = vector.shape_cast %2 : vector<1x16x33xf32> to vector<16x33xf32>
    %cst = arith.constant dense<0.000000e+00> : vector<16x33xf32>
    %4 = tpu.matmul %3, %1, %cst {dimension_numbers = #tpu.dot_dimension_numbers<[1], [0], [0], [1], [0, 0, 1, 1], [], []>} : vector<16x33xf32>, vector<33x33xf32>, vector<16x33xf32> -> vector<16x33xf32>
    %c0_5 = arith.constant 0 : index
    %c0_6 = arith.constant 0 : index
    %c0_7 = arith.constant 0 : index
    %5 = vector.load %arg3[%c0_5, %c0_6, %c0_7] : memref<3x33x256xf32, #tpu.memory_space<vmem>>, vector<1x33x256xf32>
    %6 = vector.shape_cast %5 : vector<1x33x256xf32> to vector<33x256xf32>
    %cst_8 = arith.constant dense<0.000000e+00> : vector<16x256xf32>
    %7 = tpu.matmul %4, %6, %cst_8 {dimension_numbers = #tpu.dot_dimension_numbers<[1], [0], [0], [1], [0, 0, 1, 1], [], []>} : vector<16x33xf32>, vector<33x256xf32>, vector<16x256xf32> -> vector<16x256xf32>
    %c1 = arith.constant 1 : index
    %c0_9 = arith.constant 0 : index
    %c0_10 = arith.constant 0 : index
    %8 = vector.load %arg2[%c1, %c0_9, %c0_10] : memref<3x16x33xf32, #tpu.memory_space<vmem>>, vector<1x16x33xf32>
    %9 = vector.shape_cast %8 : vector<1x16x33xf32> to vector<16x33xf32>
    %cst_11 = arith.constant dense<0.000000e+00> : vector<16x33xf32>
    %10 = tpu.matmul %9, %1, %cst_11 {dimension_numbers = #tpu.dot_dimension_numbers<[1], [0], [0], [1], [0, 0, 1, 1], [], []>} : vector<16x33xf32>, vector<33x33xf32>, vector<16x33xf32> -> vector<16x33xf32>
    %c1_12 = arith.constant 1 : index
    %c0_13 = arith.constant 0 : index
    %c0_14 = arith.constant 0 : index
    %11 = vector.load %arg3[%c1_12, %c0_13, %c0_14] : memref<3x33x256xf32, #tpu.memory_space<vmem>>, vector<1x33x256xf32>
    %12 = vector.shape_cast %11 : vector<1x33x256xf32> to vector<33x256xf32>
    %cst_15 = arith.constant dense<0.000000e+00> : vector<16x256xf32>
    %13 = tpu.matmul %10, %12, %cst_15 {dimension_numbers = #tpu.dot_dimension_numbers<[1], [0], [0], [1], [0, 0, 1, 1], [], []>} : vector<16x33xf32>, vector<33x256xf32>, vector<16x256xf32> -> vector<16x256xf32>
    %14 = arith.addf %7, %13 : vector<16x256xf32>
    %c2 = arith.constant 2 : index
    %c0_16 = arith.constant 0 : index
    %c0_17 = arith.constant 0 : index
    %15 = vector.load %arg2[%c2, %c0_16, %c0_17] : memref<3x16x33xf32, #tpu.memory_space<vmem>>, vector<1x16x33xf32>
    %16 = vector.shape_cast %15 : vector<1x16x33xf32> to vector<16x33xf32>
    %cst_18 = arith.constant dense<0.000000e+00> : vector<16x33xf32>
    %17 = tpu.matmul %16, %1, %cst_18 {dimension_numbers = #tpu.dot_dimension_numbers<[1], [0], [0], [1], [0, 0, 1, 1], [], []>} : vector<16x33xf32>, vector<33x33xf32>, vector<16x33xf32> -> vector<16x33xf32>
    %c2_19 = arith.constant 2 : index
    %c0_20 = arith.constant 0 : index
    %c0_21 = arith.constant 0 : index
    %18 = vector.load %arg3[%c2_19, %c0_20, %c0_21] : memref<3x33x256xf32, #tpu.memory_space<vmem>>, vector<1x33x256xf32>
    %19 = vector.shape_cast %18 : vector<1x33x256xf32> to vector<33x256xf32>
    %cst_22 = arith.constant dense<0.000000e+00> : vector<16x256xf32>
    %20 = tpu.matmul %17, %19, %cst_22 {dimension_numbers = #tpu.dot_dimension_numbers<[1], [0], [0], [1], [0, 0, 1, 1], [], []>} : vector<16x33xf32>, vector<33x256xf32>, vector<16x256xf32> -> vector<16x256xf32>
    %21 = arith.addf %14, %20 : vector<16x256xf32>
    %c0_23 = arith.constant 0 : index
    %c0_24 = arith.constant 0 : index
    %22 = vector.load %arg4[%c0_23, %c0_24] : memref<1x256xf32, #tpu.memory_space<vmem>>, vector<1x256xf32>
    %23 = vector.broadcast %22 : vector<1x256xf32> to vector<16x256xf32>
    %24 = arith.addf %21, %23 : vector<16x256xf32>
    %cst_25 = arith.constant 0.000000e+00 : f32
    %25 = vector.broadcast %cst_25 : f32 to vector<16x256xf32>
    %26 = arith.maximumf %24, %25 : vector<16x256xf32>
    %c0_26 = arith.constant 0 : index
    %c0_27 = arith.constant 0 : index
    %c0_28 = arith.constant 0 : index
    %27 = vector.load %arg10[%c0_26, %c0_27, %c0_28] : memref<1x16x256xf32, #tpu.memory_space<vmem>>, vector<1x16x256xf32>
    %28 = vector.shape_cast %27 : vector<1x16x256xf32> to vector<16x256xf32>
    %29 = vector.shape_cast %26 : vector<16x256xf32> to vector<1x16x256xf32>
    tpu.vector_store %arg10[%c0_26, %c0_27, %c0_28], %29 {strides = array<i32>} : memref<1x16x256xf32, #tpu.memory_space<vmem>>, vector<1x16x256xf32>,
    %c0_29 = arith.constant 0 : index
    %c0_30 = arith.constant 0 : index
    %c0_31 = arith.constant 0 : index
    %30 = vector.load %arg5[%c0_29, %c0_30, %c0_31] : memref<3x8x16xf32, #tpu.memory_space<vmem>>, vector<1x8x16xf32>
    %31 = vector.shape_cast %30 : vector<1x8x16xf32> to vector<8x16xf32>
    %cst_32 = arith.constant dense<0.000000e+00> : vector<8x256xf32>
    %32 = tpu.matmul %31, %26, %cst_32 {dimension_numbers = #tpu.dot_dimension_numbers<[1], [0], [0], [1], [0, 0, 1, 1], [], []>} : vector<8x16xf32>, vector<16x256xf32>, vector<8x256xf32> -> vector<8x256xf32>
    %c0_33 = arith.constant 0 : index
    %c0_34 = arith.constant 0 : index
    %c0_35 = arith.constant 0 : index
    %33 = vector.load %arg6[%c0_33, %c0_34, %c0_35] : memref<3x256x128xf32, #tpu.memory_space<vmem>>, vector<1x256x128xf32>
    %34 = vector.shape_cast %33 : vector<1x256x128xf32> to vector<256x128xf32>
    %cst_36 = arith.constant dense<0.000000e+00> : vector<8x128xf32>
    %35 = tpu.matmul %32, %34, %cst_36 {dimension_numbers = #tpu.dot_dimension_numbers<[1], [0], [0], [1], [0, 0, 1, 1], [], []>} : vector<8x256xf32>, vector<256x128xf32>, vector<8x128xf32> -> vector<8x128xf32>
    %c1_37 = arith.constant 1 : index
    %c0_38 = arith.constant 0 : index
    %c0_39 = arith.constant 0 : index
    %36 = vector.load %arg5[%c1_37, %c0_38, %c0_39] : memref<3x8x16xf32, #tpu.memory_space<vmem>>, vector<1x8x16xf32>
    %37 = vector.shape_cast %36 : vector<1x8x16xf32> to vector<8x16xf32>
    %cst_40 = arith.constant dense<0.000000e+00> : vector<8x256xf32>
    %38 = tpu.matmul %37, %26, %cst_40 {dimension_numbers = #tpu.dot_dimension_numbers<[1], [0], [0], [1], [0, 0, 1, 1], [], []>} : vector<8x16xf32>, vector<16x256xf32>, vector<8x256xf32> -> vector<8x256xf32>
    %c1_41 = arith.constant 1 : index
    %c0_42 = arith.constant 0 : index
    %c0_43 = arith.constant 0 : index
    %39 = vector.load %arg6[%c1_41, %c0_42, %c0_43] : memref<3x256x128xf32, #tpu.memory_space<vmem>>, vector<1x256x128xf32>
    %40 = vector.shape_cast %39 : vector<1x256x128xf32> to vector<256x128xf32>
    %cst_44 = arith.constant dense<0.000000e+00> : vector<8x128xf32>
    %41 = tpu.matmul %38, %40, %cst_44 {dimension_numbers = #tpu.dot_dimension_numbers<[1], [0], [0], [1], [0, 0, 1, 1], [], []>} : vector<8x256xf32>, vector<256x128xf32>, vector<8x128xf32> -> vector<8x128xf32>
    %42 = arith.addf %35, %41 : vector<8x128xf32>
    %c2_45 = arith.constant 2 : index
    %c0_46 = arith.constant 0 : index
    %c0_47 = arith.constant 0 : index
    %43 = vector.load %arg5[%c2_45, %c0_46, %c0_47] : memref<3x8x16xf32, #tpu.memory_space<vmem>>, vector<1x8x16xf32>
    %44 = vector.shape_cast %43 : vector<1x8x16xf32> to vector<8x16xf32>
    %cst_48 = arith.constant dense<0.000000e+00> : vector<8x256xf32>
    %45 = tpu.matmul %44, %26, %cst_48 {dimension_numbers = #tpu.dot_dimension_numbers<[1], [0], [0], [1], [0, 0, 1, 1], [], []>} : vector<8x16xf32>, vector<16x256xf32>, vector<8x256xf32> -> vector<8x256xf32>
    %c2_49 = arith.constant 2 : index
    %c0_50 = arith.constant 0 : index
    %c0_51 = arith.constant 0 : index
    %46 = vector.load %arg6[%c2_49, %c0_50, %c0_51] : memref<3x256x128xf32, #tpu.memory_space<vmem>>, vector<1x256x128xf32>
    %47 = vector.shape_cast %46 : vector<1x256x128xf32> to vector<256x128xf32>
    %cst_52 = arith.constant dense<0.000000e+00> : vector<8x128xf32>
    %48 = tpu.matmul %45, %47, %cst_52 {dimension_numbers = #tpu.dot_dimension_numbers<[1], [0], [0], [1], [0, 0, 1, 1], [], []>} : vector<8x256xf32>, vector<256x128xf32>, vector<8x128xf32> -> vector<8x128xf32>
    %49 = arith.addf %42, %48 : vector<8x128xf32>
    %c0_53 = arith.constant 0 : index
    %c0_54 = arith.constant 0 : index
    %50 = vector.load %arg7[%c0_53, %c0_54] : memref<1x128xf32, #tpu.memory_space<vmem>>, vector<1x128xf32>
    %51 = vector.broadcast %50 : vector<1x128xf32> to vector<8x128xf32>
    %52 = arith.addf %49, %51 : vector<8x128xf32>
    %cst_55 = arith.constant 0.000000e+00 : f32
    %53 = vector.broadcast %cst_55 : f32 to vector<8x128xf32>
    %54 = arith.maximumf %52, %53 : vector<8x128xf32>
    %c0_56 = arith.constant 0 : index
    %c0_57 = arith.constant 0 : index
    %55 = vector.load %arg8[%c0_56, %c0_57] : memref<128x256xf32, #tpu.memory_space<vmem>>, vector<128x256xf32>
    %cst_58 = arith.constant dense<0.000000e+00> : vector<8x256xf32>
    %56 = tpu.matmul %54, %55, %cst_58 {dimension_numbers = #tpu.dot_dimension_numbers<[1], [0], [0], [1], [0, 0, 1, 1], [], []>} : vector<8x128xf32>, vector<128x256xf32>, vector<8x256xf32> -> vector<8x256xf32>
    %c0_59 = arith.constant 0 : index
    %c0_60 = arith.constant 0 : index
    %57 = vector.load %arg9[%c0_59, %c0_60] : memref<1x256xf32, #tpu.memory_space<vmem>>, vector<1x256xf32>
    %58 = vector.broadcast %57 : vector<1x256xf32> to vector<8x256xf32>
    %59 = arith.addf %56, %58 : vector<8x256xf32>
    %cst_61 = arith.constant 0.000000e+00 : f32
    %60 = vector.broadcast %cst_61 : f32 to vector<8x256xf32>
    %61 = arith.maximumf %59, %60 : vector<8x256xf32>
    %c0_62 = arith.constant 0 : index
    %c0_63 = arith.constant 0 : index
    %c0_64 = arith.constant 0 : index
    %62 = vector.load %arg11[%c0_62, %c0_63, %c0_64] : memref<1x8x256xf32, #tpu.memory_space<vmem>>, vector<1x8x256xf32>
    %63 = vector.shape_cast %62 : vector<1x8x256xf32> to vector<8x256xf32>
    %64 = vector.shape_cast %61 : vector<8x256xf32> to vector<1x8x256xf32>
    tpu.vector_store %arg11[%c0_62, %c0_63, %c0_64], %64 {strides = array<i32>} : memref<1x8x256xf32, #tpu.memory_space<vmem>>, vector<1x8x256xf32>,
    return
  }
  func.func @transform_0(%arg0: i32) -> (i32, i32, i32) {
    %c0_i32 = arith.constant 0 : i32
    %c0_i32_0 = arith.constant 0 : i32
    %c0_i32_1 = arith.constant 0 : i32
    return %arg0, %c0_i32, %c0_i32_0 : i32, i32, i32
  }
  func.func @transform_1(%arg0: i32) -> (i32, i32, i32) {
    %c0_i32 = arith.constant 0 : i32
    %c0_i32_0 = arith.constant 0 : i32
    %c0_i32_1 = arith.constant 0 : i32
    %c0_i32_2 = arith.constant 0 : i32
    return %c0_i32, %c0_i32_0, %c0_i32_1 : i32, i32, i32
  }
  func.func @transform_2(%arg0: i32) -> (i32, i32, i32) {
    %c0_i32 = arith.constant 0 : i32
    %c0_i32_0 = arith.constant 0 : i32
    %c0_i32_1 = arith.constant 0 : i32
    %c0_i32_2 = arith.constant 0 : i32
    return %c0_i32, %c0_i32_0, %c0_i32_1 : i32, i32, i32
  }
  func.func @transform_3(%arg0: i32) -> (i32, i32) {
    %c0_i32 = arith.constant 0 : i32
    %c0_i32_0 = arith.constant 0 : i32
    %c0_i32_1 = arith.constant 0 : i32
    return %c0_i32, %c0_i32_0 : i32, i32
  }
  func.func @transform_4(%arg0: i32) -> (i32, i32, i32) {
    %c0_i32 = arith.constant 0 : i32
    %c0_i32_0 = arith.constant 0 : i32
    %c0_i32_1 = arith.constant 0 : i32
    %c0_i32_2 = arith.constant 0 : i32
    return %c0_i32, %c0_i32_0, %c0_i32_1 : i32, i32, i32
  }
  func.func @transform_5(%arg0: i32) -> (i32, i32, i32) {
    %c0_i32 = arith.constant 0 : i32
    %c0_i32_0 = arith.constant 0 : i32
    %c0_i32_1 = arith.constant 0 : i32
    %c0_i32_2 = arith.constant 0 : i32
    return %c0_i32, %c0_i32_0, %c0_i32_1 : i32, i32, i32
  }
  func.func @transform_6(%arg0: i32) -> (i32, i32) {
    %c0_i32 = arith.constant 0 : i32
    %c0_i32_0 = arith.constant 0 : i32
    %c0_i32_1 = arith.constant 0 : i32
    return %c0_i32, %c0_i32_0 : i32, i32
  }
  func.func @transform_7(%arg0: i32) -> (i32, i32) {
    %c0_i32 = arith.constant 0 : i32
    %c0_i32_0 = arith.constant 0 : i32
    %c0_i32_1 = arith.constant 0 : i32
    return %c0_i32, %c0_i32_0 : i32, i32
  }
  func.func @transform_8(%arg0: i32) -> (i32, i32) {
    %c0_i32 = arith.constant 0 : i32
    %c0_i32_0 = arith.constant 0 : i32
    %c0_i32_1 = arith.constant 0 : i32
    return %c0_i32, %c0_i32_0 : i32, i32
  }
  func.func @transform_9(%arg0: i32) -> (i32, i32, i32) {
    %c0_i32 = arith.constant 0 : i32
    %c0_i32_0 = arith.constant 0 : i32
    %c0_i32_1 = arith.constant 0 : i32
    return %arg0, %c0_i32, %c0_i32_0 : i32, i32, i32
  }
  func.func @transform_10(%arg0: i32) -> (i32, i32, i32) {
    %c0_i32 = arith.constant 0 : i32
    %c0_i32_0 = arith.constant 0 : i32
    %c0_i32_1 = arith.constant 0 : i32
    return %arg0, %c0_i32, %c0_i32_0 : i32, i32, i32
  }
}

</mosaic_0001>

<bundles_post_ra>
// kernel: tile.18
= control target key start
LH: loop header
LB: loop body
LE: loop exit
PB: predicated region body
PF: predicated region fallthrough
CT: control target
= control target key end

     0   :  { %s28_s0 = inlined_call_operand.vmem [shape: f32[16], index: 0, kind: input, shape index: {}]   ;;  %s29_s1 = inlined_call_operand.vmem [shape: f32[16,16], index: 1, kind: output, shape index: {}]  }
   0x1   :  { %v4_v0 = vld [vmem:[%s28_s0] ss:$0 sm:$0xff] }
   0x2   :  { %5 = vst [vmem:[%s29_s1] sm:$0xff] %v4_v0  ;;  %8 = vst [vmem:[%s29_s1 + $0x8] sm:$0xff] %v4_v0 }

// kernel: tile.19
= control target key start
LH: loop header
LB: loop body
LE: loop exit
PB: predicated region body
PF: predicated region fallthrough
CT: control target
= control target key end

     0   :  { %s7_s6 = smov 3  ;;  %s21_s9 = smov 3  ;;  %vm4_vm0 = vcmask 130048   ;;  %vm11_vm1 = vcmask 1048448   ;;  %vm18_vm2 = vcmask 917248   ;;  %vm25_vm3 = vcmask 786048   ;;  %s131_s0 = inlined_call_operand.vmem [shape: f32[16,16], index: 0, kind: input, shape index: {}]   ;;  %s132_s1 = inlined_call_operand.vmem [shape: f32[1,256], index: 1, kind: output, shape index: {}]  }
   0x1   :  { %v69_v0 = vld [vmem:[%s131_s0 + $0x7] ss:$8 sm:%s7_s6]   ;;  %s84_s10 = smov 112   ;;  %v71_v1 = vld [vmem:[%s131_s0 + $0x5] ss:$8 sm:%s21_s9]   ;;  %s14_s13 = smov 3 }
   0x2   :  { %9 = vrot.lane.b32.xlu0 %v69_v0, %s84_s10  ;;  %s85_s14 = smov 80   ;;  %v70_v2 = vld [vmem:[%s131_s0 + $0x6] ss:$8 sm:%s14_s13]   ;;  %s28_s17 = smov 3  ;;  %vm32_vm4 = vcmask 654848   ;;  %vm39_vm5 = vcmask 523648  }
   0x3   :  { %23 = vrot.lane.b32.xlu1 %v71_v1, %s85_s14  ;;  %v72_v3 = vld [vmem:[%s131_s0 + $0x4] ss:$8 sm:%s28_s17]   ;;  %s35_s20 = smov 3  ;;  %s42_s21 = smov 3  ;;  %vm46_vm6 = vcmask 392448   ;;  %vm53_vm7 = vcmask 261248  }
   0x4   :  { %s86_s22 = smov 96   ;;  %s87_s23 = smov 64   ;;  %v73_v4 = vld [vmem:[%s131_s0 + $0x3] ss:$8 sm:%s35_s20]   ;;  %v74_v5 = vld [vmem:[%s131_s0 + $0x2] ss:$8 sm:%s42_s21]  }
   0x5   :  { %s2_s26 = smov 3  ;;  %s49_s29 = smov 3 }
   0x6   :  { %16 = vrot.lane.b32.xlu0 %v70_v2, %s86_s22  ;;  %v3_v6 = vld [vmem:[%s131_s0] ss:$8 sm:%s2_s26]   ;;  %s88_s3 = smov 48   ;;  %s89_s4 = smov 32  }
   0x7   :  { %30 = vrot.lane.b32.xlu1 %v72_v3, %s87_s23  ;;  %5 = vst.msk [vmem:[#allocation0] ss:$8 sm:$0x3] %vm4_vm0, %v3_v6   ;;  %v75_v7 = vld [vmem:[%s131_s0 + $0x1] ss:$8 sm:%s49_s29]   ;;  %s90_s0 = smov 16  }
   0xa   :  { %37 = vrot.lane.b32.xlu0 %v73_v4, %s88_s3 }
   0xb   :  { %44 = vrot.lane.b32.xlu1 %v74_v5, %s89_s4 }
   0xe   :  { %51 = vrot.lane.b32.xlu0 %v75_v7, %s90_s0 }
  0x74   :  { %v10_v8 = vpop.permute.xlu0 %9  }
  0x75   :  { %12 = vst.msk [vmem:[#allocation0] ss:$8 sm:$0x3] %vm11_vm1, %v10_v8   ;;  %v24_v9 = vpop.permute.xlu1 %23  }
  0x78   :  { %v17_v10 = vpop.permute.xlu0 %16  }
  0x79   :  { %19 = vst.msk [vmem:[#allocation0] ss:$8 sm:$0x3] %vm18_vm2, %v17_v10   ;;  %v31_v11 = vpop.permute.xlu1 %30  }
  0x7a   :  { %26 = vst.msk [vmem:[#allocation0] ss:$8 sm:$0x3] %vm25_vm3, %v24_v9  }
  0x7b   :  { %33 = vst.msk [vmem:[#allocation0] ss:$8 sm:$0x3] %vm32_vm4, %v31_v11  }
  0x7c   :  { %v38_v12 = vpop.permute.xlu0 %37  }
  0x7d   :  { %40 = vst.msk [vmem:[#allocation0] ss:$8 sm:$0x3] %vm39_vm5, %v38_v12   ;;  %v45_v13 = vpop.permute.xlu1 %44  }
  0x7e   :  { %47 = vst.msk [vmem:[#allocation0] ss:$8 sm:$0x3] %vm46_vm6, %v45_v13  }
  0x80   :  { %v52_v14 = vpop.permute.xlu0 %51  }
  0x81   :  { %54 = vst.msk [vmem:[#allocation0] ss:$8 sm:$0x3] %vm53_vm7, %v52_v14  }
  0x88   :  { %v59_v15 = vld [vmem:[#allocation0] sm:$0x1]  ;;  %v64_v16 = vld [vmem:[#allocation0 + $0x8] sm:$0x1] }
  0x89   :  { %62 = vst [vmem:[%s132_s1] sm:$0x1] %v59_v15  ;;  %76 = vst [vmem:[%s132_s1 + $0x1] sm:$0x1] %v64_v16 }

// kernel: tile.28
= control target key start
LH: loop header
LB: loop body
LE: loop exit
PB: predicated region body
PF: predicated region fallthrough
CT: control target
= control target key end

     0   :  { %s22_s0 = inlined_call_operand.vmem [shape: f32[32], index: 0, kind: input, shape index: {}]   ;;  %s23_s1 = inlined_call_operand.vmem [shape: f32[8,32], index: 1, kind: output, shape index: {}]  }
   0x1   :  { %v4_v0 = vld [vmem:[%s22_s0] ss:$0 sm:$0xff] }
   0x2   :  { %5 = vst [vmem:[%s23_s1] sm:$0xff] %v4_v0 }

// kernel: tile.29
= control target key start
LH: loop header
LB: loop body
LE: loop exit
PB: predicated region body
PF: predicated region fallthrough
CT: control target
= control target key end

     0   :  { %s7_s6 = smov 3  ;;  %s14_s9 = smov 3  ;;  %vm4_vm0 = vcmask 261120   ;;  %vm11_vm1 = vcmask 1048320   ;;  %vm18_vm2 = vcmask 785920   ;;  %vm25_vm3 = vcmask 523520   ;;  %s79_s0 = inlined_call_operand.vmem [shape: f32[8,32], index: 0, kind: input, shape index: {}]   ;;  %s80_s1 = inlined_call_operand.vmem [shape: f32[1,256], index: 1, kind: output, shape index: {}]  }
   0x1   :  { %v41_v0 = vld [vmem:[%s79_s0 + $0x3] ss:$4 sm:%s7_s6]   ;;  %s48_s10 = smov 96   ;;  %s21_s11 = smov 3  ;;  %v42_v1 = vld [vmem:[%s79_s0 + $0x2] ss:$4 sm:%s14_s9]  }
   0x2   :  { %9 = vrot.lane.b32.xlu0 %v41_v0, %s48_s10  ;;  %v43_v2 = vld [vmem:[%s79_s0 + $0x1] ss:$4 sm:%s21_s11]   ;;  %s2_s16 = smov 3  ;;  %s49_s17 = smov 32  }
   0x3   :  { %23 = vrot.lane.b32.xlu1 %v43_v2, %s49_s17  ;;  %v3_v3 = vld [vmem:[%s79_s0] ss:$4 sm:%s2_s16]   ;;  %s50_s0 = smov 64  }
   0x4   :  { %5 = vst.msk [vmem:[#allocation0] ss:$8 sm:$0x3] %vm4_vm0, %v3_v3  }
   0x6   :  { %16 = vrot.lane.b32.xlu0 %v42_v1, %s50_s0 }
  0x74   :  { %v10_v4 = vpop.permute.xlu0 %9  }
  0x75   :  { %12 = vst.msk [vmem:[#allocation0] ss:$8 sm:$0x3] %vm11_vm1, %v10_v4   ;;  %v24_v5 = vpop.permute.xlu1 %23  }
  0x78   :  { %v17_v6 = vpop.permute.xlu0 %16  }
  0x79   :  { %19 = vst.msk [vmem:[#allocation0] ss:$8 sm:$0x3] %vm18_vm2, %v17_v6  }
  0x7a   :  { %26 = vst.msk [vmem:[#allocation0] ss:$8 sm:$0x3] %vm25_vm3, %v24_v5  }
  0x81   :  { %v31_v7 = vld [vmem:[#allocation0] sm:$0x1]  ;;  %v36_v8 = vld [vmem:[#allocation0 + $0x8] sm:$0x1] }
  0x82   :  { %34 = vst [vmem:[%s80_s1] sm:$0x1] %v31_v7  ;;  %44 = vst [vmem:[%s80_s1 + $0x1] sm:$0x1] %v36_v8 }

// kernel: tile.23
= control target key start
LH: loop header
LB: loop body
LE: loop exit
PB: predicated region body
PF: predicated region fallthrough
CT: control target
= control target key end

     0   :  { %s22_s0 = inlined_call_operand.vmem [shape: f32[16], index: 0, kind: input, shape index: {}]   ;;  %s23_s1 = inlined_call_operand.vmem [shape: f32[8,16], index: 1, kind: output, shape index: {}]  }
   0x1   :  { %v4_v0 = vld [vmem:[%s22_s0] ss:$0 sm:$0xff] }
   0x2   :  { %5 = vst [vmem:[%s23_s1] sm:$0xff] %v4_v0 }

// kernel: tile.24
= control target key start
LH: loop header
LB: loop body
LE: loop exit
PB: predicated region body
PF: predicated region fallthrough
CT: control target
= control target key end

     0   :  { %s69_s10 = smov 112   ;;  %s70_s11 = smov 80   ;;  %vm3_vm0 = vcmask 130048   ;;  %vm9_vm1 = vcmask 1048448   ;;  %vm15_vm2 = vcmask 917248   ;;  %vm21_vm3 = vcmask 786048   ;;  %s113_s0 = inlined_call_operand.vmem [shape: f32[8,16], index: 0, kind: input, shape index: {}]   ;;  %s114_s1 = inlined_call_operand.vmem [shape: f32[1,128], index: 1, kind: output, shape index: {}]  }
   0x1   :  { %v55_v0 = vld [vmem:[%s113_s0 + $0x7] sm:$0x1]   ;;  %v57_v1 = vld [vmem:[%s113_s0 + $0x5] sm:$0x1]   ;;  %v56_v2 = vld [vmem:[%s113_s0 + $0x6] sm:$0x1]  }
   0x2   :  { %7 = vrot.lane.b32.xlu0 %v55_v0, %s69_s10  ;;  %19 = vrot.lane.b32.xlu1 %v57_v1, %s70_s11  ;;  %v58_v3 = vld [vmem:[%s113_s0 + $0x4] sm:$0x1]   ;;  %v2_v4 = vld [vmem:[%s113_s0] sm:$0x1]   ;;  %s71_s18 = smov 96   ;;  %s72_s19 = smov 64  }
   0x3   :  { %4 = vst.msk [vmem:[#allocation0] sm:$0x1] %vm3_vm0, %v2_v4   ;;  %v59_v5 = vld [vmem:[%s113_s0 + $0x3] sm:$0x1]   ;;  %v60_v6 = vld [vmem:[%s113_s0 + $0x2] sm:$0x1]  }
   0x4   :  { %s73_s24 = smov 48   ;;  %s74_s25 = smov 32   ;;  %v61_v7 = vld [vmem:[%s113_s0 + $0x1] sm:$0x1]   ;;  %vm27_vm4 = vcmask 654848   ;;  %vm33_vm5 = vcmask 523648  }
   0x5   :  { %s75_s0 = smov 16   ;;  %vm39_vm6 = vcmask 392448   ;;  %vm45_vm7 = vcmask 261248  }
   0x6   :  { %13 = vrot.lane.b32.xlu0 %v56_v2, %s71_s18  ;;  %25 = vrot.lane.b32.xlu1 %v58_v3, %s72_s19 }
   0xa   :  { %31 = vrot.lane.b32.xlu0 %v59_v5, %s73_s24  ;;  %37 = vrot.lane.b32.xlu1 %v60_v6, %s74_s25 }
   0xe   :  { %43 = vrot.lane.b32.xlu0 %v61_v7, %s75_s0 }
  0x74   :  { %v8_v8 = vpop.permute.xlu0 %7   ;;  %v20_v9 = vpop.permute.xlu1 %19  }
  0x75   :  { %10 = vst.msk [vmem:[#allocation0] sm:$0x1] %vm9_vm1, %v8_v8  }
  0x78   :  { %v14_v10 = vpop.permute.xlu0 %13   ;;  %v26_v11 = vpop.permute.xlu1 %25  }
  0x79   :  { %16 = vst.msk [vmem:[#allocation0] sm:$0x1] %vm15_vm2, %v14_v10  }
  0x7a   :  { %22 = vst.msk [vmem:[#allocation0] sm:$0x1] %vm21_vm3, %v20_v9  }
  0x7b   :  { %28 = vst.msk [vmem:[#allocation0] sm:$0x1] %vm27_vm4, %v26_v11  }
  0x7c   :  { %v32_v12 = vpop.permute.xlu0 %31   ;;  %v38_v13 = vpop.permute.xlu1 %37  }
  0x7d   :  { %34 = vst.msk [vmem:[#allocation0] sm:$0x1] %vm33_vm5, %v32_v12  }
  0x7e   :  { %40 = vst.msk [vmem:[#allocation0] sm:$0x1] %vm39_vm6, %v38_v13  }
  0x80   :  { %v44_v14 = vpop.permute.xlu0 %43  }
  0x81   :  { %46 = vst.msk [vmem:[#allocation0] sm:$0x1] %vm45_vm7, %v44_v14  }
  0x88   :  { %v51_v15 = vld [vmem:[#allocation0] sm:$0x1] }
  0x89   :  { %54 = vst [vmem:[%s114_s1] sm:$0x1] %v51_v15 }

// kernel: downsample_forward.1
= control target key start
LH: loop header
LB: loop body
LE: loop exit
PB: predicated region body
PF: predicated region fallthrough
CT: control target
= control target key end

     0   :  { %s2082_s13 = smov 0   ;;  %s2736_s0 = inlined_call_operand.vmem [shape: f32[2,33,33], index: 0, kind: input, shape index: {}]   ;;  %s2737_s1 = inlined_call_operand.vmem [shape: f32[3,16,33], index: 1, kind: input, shape index: {}]   ;;  %s2738_s2 = inlined_call_operand.vmem [shape: f32[3,33,256], index: 2, kind: input, shape index: {}]   ;;  %s2739_s3 = inlined_call_operand.vmem [shape: f32[1,256], index: 3, kind: input, shape index: {}]   ;;  %s2740_s4 = inlined_call_operand.vmem [shape: f32[3,8,16], index: 4, kind: input, shape index: {}]   ;;  %s2741_s5 = inlined_call_operand.vmem [shape: f32[3,256,128], index: 5, kind: input, shape index: {}]   ;;  %s2742_s6 = inlined_call_operand.vmem [shape: f32[1,128], index: 6, kind: input, shape index: {}]   ;;  %s2743_s7 = inlined_call_operand.vmem [shape: f32[128,256], index: 7, kind: input, shape index: {}]   ;;  %s2744_s8 = inlined_call_operand.vmem [shape: f32[1,256], index: 8, kind: input, shape index: {}]   ;;  %s2745_s9 = inlined_call_operand.vmem [shape: f32[2,16,256], index: 9, kind: output, shape index: {0}]   ;;  %s2746_s10 = inlined_call_operand.vmem [shape: f32[2,8,256], index: 10, kind: output, shape index: {1}]  }
   0x1 LB: > { %s1714_s14 = sadd.s32 4294967295, %s2024_s13   ;;  %p1718_p0 = scmp.ge.s32.totalorder %s2024_s13, 1  ;;  %s2024_s13 = sphi %s2082_s13, %s21_s13  }
   0x2   : > { %p315_p1 = scmp.lt.s32.totalorder %s2024_s13, 3 }
   0x4   : > { %p316_p2 = pnand %p1718_p0, %p315_p1 }
   0x5   : > { %p358_p3 = scmp.lt.s32.totalorder (!%p316_p2), %s1714_s14, 1 }
   0x6   : > { %319 = sbr.rel (%p316_p2) target bundleno = 1438 (0x59e), region = 56 }
   0xb   : > { %v378_v0 = vld [vmem:[%s2737_s1] sm:$0xff]  ;;  %vm380_vm0 = vcmask 269312   ;;  %v1727_v1 = vld [vmem:[%s2737_s1 + $0x10] sm:$0xff]  ;;  %s2748_s14 = smov (!%p358_p3, %s1714_s14), 1  ;;  %vm387_vm1 = vcmask 1040384   ;;  %v379_v7 = vld [vmem:[%s2737_s1 + $0x8] sm:$0xff] }
   0xc   : > { %1979 = vmatprep.mubr.msk.f32.mxu0 %vm380_vm0, %v378_v0  ;;  %1992 = vmatprep.mubr.msk.f32.mxu1 %vm380_vm0, %v1727_v1  ;;  %s2008_s19 = smul.u32 40, %s2748_s14  ;;  %v1728_v8 = vld [vmem:[%s2737_s1 + $0x18] sm:$0xff]  ;;  %v475_v10 = vld [vmem:[%s2738_s2 + $0x48] sm:$0x1]  ;;  %v1740_v11 = vld [vmem:[%s2738_s2 + $0x90] sm:$0x1] }
   0xd   : > { %v1741_v9 = vld [vmem:[%s2738_s2 + $0x98] sm:$0x1]  ;;  %v474_v12 = vld [vmem:[%s2738_s2 + $0x40] sm:$0x1]  ;;  %v1739_v13 = vld [vmem:[%s2738_s2 + $0x88] sm:$0xff]  ;;  %v2026_v29 = vmov 0.0  }
   0xe   : > { %s362_s22 = scalar_lea.vmem %s2736_s0, %s2008_s19  ;;  %v473_v14 = vld [vmem:[%s2738_s2 + $0x38] sm:$0xff]  ;;  %v1738_v15 = vld [vmem:[%s2738_s2 + $0x80] sm:$0xff]  ;;  %v472_v16 = vld [vmem:[%s2738_s2 + $0x30] sm:$0xff]  ;;  %s1841_s11 = sshll.u32 %s2748_s14, 5  ;;  %vm962_vm2 = vcmask 130048  }
   0xf   : > { %v2104_v2 = vld [vmem:[%s362_s22 + $0x20] sm:$0x1]  ;;  %v2106_v3 = vld [vmem:[%s362_s22 + $0x18] sm:$0xff]  ;;  %v2116_v4 = vld [vmem:[%s362_s22 + $0x10] sm:$0xff]  ;;  %s367_s16 = scalar_lea.vmem %s2745_s9, %s1841_s11  ;;  %s1842_s21 = sshll.u32 %s2748_s14, 4 }
  0x10   : > { %1969 = vmatprep.subr.msk.mxu0 %vm387_vm1, %v2104_v2  ;;  %1982 = vmatprep.subr.msk.mxu1 %vm387_vm1, %v2104_v2  ;;  %v2122_v5 = vld [vmem:[%s362_s22 + $0x8] sm:$0xff]  ;;  %v2128_v6 = vld [vmem:[%s362_s22] sm:$0xff]  ;;  %v1737_v17 = vld [vmem:[%s2738_s2 + $0x78] sm:$0xff]  ;;  %s372_s24 = scalar_lea.vmem %s2746_s10, %s1842_s21 }
  0x11   : > { %1970 = vmatpush3.msk.msra.mxu0 %vm387_vm1, %v2104_v2  ;;  %1983 = vmatpush3.msk.msra.mxu1 %vm387_vm1, %v2104_v2  ;;  %v471_v18 = vld [vmem:[%s2738_s2 + $0x28] sm:$0xff]  ;;  %v1736_v19 = vld [vmem:[%s2738_s2 + $0x70] sm:$0xff]  ;;  %v470_v20 = vld [vmem:[%s2738_s2 + $0x20] sm:$0xff] }
  0x12   : > { %1971 = vmatprep.subr.mxu0 %v2106_v3  ;;  %1984 = vmatprep.subr.mxu1 %v2106_v3  ;;  %v1735_v21 = vld [vmem:[%s2738_s2 + $0x68] sm:$0xff]  ;;  %v469_v22 = vld [vmem:[%s2738_s2 + $0x18] sm:$0xff]  ;;  %v1734_v23 = vld [vmem:[%s2738_s2 + $0x60] sm:$0xff] }
  0x13   : > { %1972 = vmatpush3.msra.mxu0 %v2106_v3  ;;  %1985 = vmatpush3.msra.mxu1 %v2106_v3  ;;  %v1733_v24 = vld [vmem:[%s2738_s2 + $0x58] sm:$0xff]  ;;  %v468_v25 = vld [vmem:[%s2738_s2 + $0x10] sm:$0xff]  ;;  %v467_v27 = vld [vmem:[%s2738_s2 + $0x8] sm:$0xff] }
  0x14   : > { %1973 = vmatprep.subr.mxu0 %v2116_v4  ;;  %1986 = vmatprep.subr.mxu1 %v2116_v4  ;;  %v1732_v26 = vld [vmem:[%s2738_s2 + $0x50] sm:$0xff]  ;;  %v466_v28 = vld [vmem:[%s2738_s2] sm:$0xff]  ;;  %v1751_v35 = vld [vmem:[%s2737_s1 + $0x28] sm:$0xff] }
  0x15   : > { %1974 = vmatpush3.msra.mxu0 %v2116_v4  ;;  %1987 = vmatpush3.msra.mxu1 %v2116_v4  ;;  %v1750_v34 = vld [vmem:[%s2737_s1 + $0x20] sm:$0xff]  ;;  %v1764_v36 = vld [vmem:[%s2738_s2 + $0xe8] sm:$0x1]  ;;  %v1762_v38 = vld [vmem:[%s2738_s2 + $0xd8] sm:$0xff] }
  0x16   : > { %1975 = vmatprep.subr.mxu0 %v2122_v5  ;;  %1988 = vmatprep.subr.mxu1 %v2122_v5  ;;  %v1763_v37 = vld [vmem:[%s2738_s2 + $0xe0] sm:$0x1]  ;;  %v1761_v39 = vld [vmem:[%s2738_s2 + $0xd0] sm:$0xff]  ;;  %v1760_v40 = vld [vmem:[%s2738_s2 + $0xc8] sm:$0xff] }
  0x17   : > { %1976 = vmatpush3.msra.mxu0 %v2122_v5  ;;  %1989 = vmatpush3.msra.mxu1 %v2122_v5  ;;  %v1759_v41 = vld [vmem:[%s2738_s2 + $0xc0] sm:$0xff]  ;;  %v1758_v42 = vld [vmem:[%s2738_s2 + $0xb8] sm:$0xff]  ;;  %v1757_v43 = vld [vmem:[%s2738_s2 + $0xb0] sm:$0xff] }
  0x18   : > { %1977 = vmatprep.subr.mxu0 %v2128_v6  ;;  %1990 = vmatprep.subr.mxu1 %v2128_v6  ;;  %v1756_v44 = vld [vmem:[%s2738_s2 + $0xa8] sm:$0xff]  ;;  %v1755_v45 = vld [vmem:[%s2738_s2 + $0xa0] sm:$0xff]  ;;  %v1803_v46 = vld [vmem:[%s2741_s5 + $0x1f8] sm:$0xff] }
  0x19   : > { %1978 = vmatpush3.msra.mxu0 %v2128_v6  ;;  %1991 = vmatpush3.msra.mxu1 %v2128_v6  ;;  %v1787_v52 = vld [vmem:[%s2741_s5 + $0x178] sm:$0xff]  ;;  %v1802_v54 = vld [vmem:[%s2741_s5 + $0x1f0] sm:$0xff]  ;;  %v1801_v56 = vld [vmem:[%s2741_s5 + $0x1e8] sm:$0xff] }
  0x1a   : > { %1980 = vmatmul.mubr.msk.f32.vlgmr.msra.gmra.mxu0 %vm380_vm0, %v379_v7  ;;  %1993 = vmatmul.mubr.msk.f32.vlgmr.msra.gmra.mxu1 %vm380_vm0, %v1728_v8  ;;  %v1786_v55 = vld [vmem:[%s2741_s5 + $0x170] sm:$0xff]  ;;  %v1785_v57 = vld [vmem:[%s2741_s5 + $0x168] sm:$0xff]  ;;  %v1800_v58 = vld [vmem:[%s2741_s5 + $0x1e0] sm:$0xff] }
  0x1b   : > { %1742 = vmatprep.subr.msk.mxu0 %vm387_vm1, %v1741_v9  ;;  %1746 = vmatprep.subr.msk.mxu1 %vm387_vm1, %v475_v10  ;;  %v1784_v59 = vld [vmem:[%s2741_s5 + $0x160] sm:$0xff]  ;;  %v1799_v60 = vld [vmem:[%s2741_s5 + $0x1d8] sm:$0xff]  ;;  %v1798_v62 = vld [vmem:[%s2741_s5 + $0x1d0] sm:$0xff] }
  0x1c   : > { %1743 = vmatpush1.msk.msra.mxu0 %vm387_vm1, %v1740_v11  ;;  %1747 = vmatpush1.msk.msra.mxu1 %vm387_vm1, %v474_v12  ;;  %v1783_v61 = vld [vmem:[%s2741_s5 + $0x158] sm:$0xff]  ;;  %v1782_v63 = vld [vmem:[%s2741_s5 + $0x150] sm:$0xff]  ;;  %v1797_v0 = vld [vmem:[%s2741_s5 + $0x1c8] sm:$0xff] }
  0x1d   : > { %607 = vmatprep.subr.mxu0 %v1739_v13  ;;  %696 = vmatprep.subr.mxu1 %v473_v14  ;;  %v1781_v1 = vld [vmem:[%s2741_s5 + $0x148] sm:$0xff]  ;;  %v1778_v7 = vld [vmem:[%s2741_s5 + $0x130] sm:$0xff]  ;;  %v1792_v10 = vld [vmem:[%s2741_s5 + $0x1a0] sm:$0xff] }
  0x1e   : > { %608 = vmatpush1.msra.mxu0 %v1738_v15  ;;  %697 = vmatpush1.msra.mxu1 %v472_v16  ;;  %v1793_v8 = vld [vmem:[%s2741_s5 + $0x1a8] sm:$0xff]  ;;  %v1776_v11 = vld [vmem:[%s2741_s5 + $0x120] sm:$0xff]  ;;  %v1791_v12 = vld [vmem:[%s2741_s5 + $0x198] sm:$0xff] }
  0x1f   : > { %609 = vmatprep.subr.mxu0 %v1737_v17  ;;  %698 = vmatprep.subr.mxu1 %v471_v18  ;;  %v1777_v9 = vld [vmem:[%s2741_s5 + $0x128] sm:$0xff]  ;;  %v1775_v13 = vld [vmem:[%s2741_s5 + $0x118] sm:$0xff]  ;;  %v1790_v14 = vld [vmem:[%s2741_s5 + $0x190] sm:$0xff] }
  0x20   : > { %610 = vmatpush1.msra.mxu0 %v1736_v19  ;;  %699 = vmatpush1.msra.mxu1 %v470_v20  ;;  %v1774_v15 = vld [vmem:[%s2741_s5 + $0x110] sm:$0xff]  ;;  %v1789_v16 = vld [vmem:[%s2741_s5 + $0x188] sm:$0xff]  ;;  %v1788_v18 = vld [vmem:[%s2741_s5 + $0x180] sm:$0xff] }
  0x21   : > { %611 = vmatprep.subr.mxu0 %v1735_v21  ;;  %700 = vmatprep.subr.mxu1 %v469_v22  ;;  %v1773_v17 = vld [vmem:[%s2741_s5 + $0x108] sm:$0xff]  ;;  %v1772_v19 = vld [vmem:[%s2741_s5 + $0x100] sm:$0xff]  ;;  %v939_v21 = vlaneseq }
  0x22   : > { %612 = vmatpush1.msra.mxu0 %v1734_v23  ;;  %701 = vmatpush1.msra.mxu1 %v468_v25 }
  0x23   : > { %613 = vmatprep.subr.mxu0 %v1733_v24  ;;  %702 = vmatprep.subr.mxu1 %v467_v27  ;;  %v2379_v23 = vshrl.u32 %v939_v21, 7  ;;  %v1037_v21 = vld [vmem:[%s2741_s5] sm:$0xff] }
  0x24   : > { %614 = vmatpush1.msra.mxu0 %v1732_v26  ;;  %647 = vmatprep.mubr.f32.mxu0 %v2026_v29  ;;  %v937_v26 = vld [vmem:[%s2739_s3] sm:$0x3] }
  0x25   : > { %703 = vmatpush1.msra.mxu1 %v466_v28  ;;  %736 = vmatprep.mubr.f32.mxu1 %v2026_v29  ;;  %v941_v25 = vsub.s32 0, %v2379_v23  ;;  %v945_v27 = vsub.s32 1, %v2379_v23 }
  0x26   : > { %1995 = vmatprep.subr.msk.mxu0 %vm387_vm1, %v2104_v2  ;;  %1765 = vmatprep.subr.msk.mxu1 %vm387_vm1, %v1764_v36 }
  0xda   : > { %v1981_v30 = vpop.f32.mrf.mxu0  ;;  %v1994_v31 = vpop.f32.mrf.mxu1 }
  0xdc   : > { %v457_v32 = vpop.f32.mrf.mxu0  ;;  %v551_v33 = vpop.f32.mrf.mxu1 }
  0xdd   : > { %1744 = vmatmul.mubr.msk.f32.vlgmr.msra.gmra.mxu0 %vm380_vm0, %v551_v33  ;;  %1748 = vmatmul.mubr.msk.f32.vlgmr.msra.gmra.mxu1 %vm380_vm0, %v457_v32 }
  0xde   : > { %1996 = vmatpush3.msk.msra.mxu0 %vm387_vm1, %v2104_v2  ;;  %653 = vmatprep.mubr.f32.mxu0 %v2026_v29  ;;  %v1796_v2 = vld [vmem:[%s2741_s5 + $0x1c0] sm:$0xff] }
  0xdf   : > { %1997 = vmatprep.subr.mxu0 %v2106_v3  ;;  %742 = vmatprep.mubr.f32.mxu1 %v2026_v29 }
  0xe0   : > { %1998 = vmatpush3.msra.mxu0 %v2106_v3  ;;  %1766 = vmatpush1.msk.msra.mxu1 %vm387_vm1, %v1763_v37  ;;  %v1780_v3 = vld [vmem:[%s2741_s5 + $0x140] sm:$0xff] }
  0xe1   : > { %1999 = vmatprep.subr.mxu0 %v2116_v4  ;;  %1745 = vmatmul.mubr.msk.f32.gmra.mxu0 %vm380_vm0, %v1994_v31  ;;  %v942_v31 = vrot.slane %v937_v26, %v941_v25 }
  0xe2   : > { %1749 = vmatmul.mubr.msk.f32.gmra.mxu1 %vm380_vm0, %v1981_v30  ;;  %2000 = vmatpush3.msra.mxu0 %v2116_v4  ;;  %v1795_v4 = vld [vmem:[%s2741_s5 + $0x1b8] sm:$0xff] }
  0xe3   : > { %2001 = vmatprep.subr.mxu0 %v2122_v5  ;;  %2005 = vmatprep.mubr.msk.f32.mxu0 %vm380_vm0, %v1750_v34 }
  0xe4   : > { %2002 = vmatpush3.msra.mxu0 %v2122_v5  ;;  %920 = vmatprep.mubr.f32.mxu1 %v2026_v29  ;;  %v1779_v5 = vld [vmem:[%s2741_s5 + $0x138] sm:$0xff] }
  0xe5   : > { %2003 = vmatprep.subr.mxu0 %v2128_v6  ;;  %880 = vmatprep.subr.mxu1 %v1762_v38 }
  0xe6   : > { %2004 = vmatpush3.msra.mxu0 %v2128_v6  ;;  %881 = vmatpush1.msra.mxu1 %v1761_v39  ;;  %v1794_v6 = vld [vmem:[%s2741_s5 + $0x1b0] sm:$0xff] }
  0xe7   : > { %2006 = vmatmul.mubr.msk.f32.vlgmr.msra.gmra.mxu0 %vm380_vm0, %v1751_v35  ;;  %882 = vmatprep.subr.mxu1 %v1760_v40  ;;  %v946_v35 = vrot.slane %v937_v26, %v945_v27 }
  0xe8   : > { %1030 = vmatprep.mubr.f32.mxu0 %v2026_v29  ;;  %883 = vmatpush1.msra.mxu1 %v1759_v41 }
  0xe9   : > { %884 = vmatprep.subr.mxu1 %v1758_v42 }
  0xea   : > { %885 = vmatpush1.msra.mxu1 %v1757_v43 }
  0xeb   : > { %886 = vmatprep.subr.mxu1 %v1756_v44 }
  0xec   : > { %887 = vmatpush1.msra.mxu1 %v1755_v45 }
  0xed   : > { %1864 = vmatprep.subr.mxu1 %v1803_v46 }
 0x19d   : > { %v2275_v47 = vpop.f32.mrf.mxu0  ;;  %v738_v20 = vpop.f32.mrf.mxu1 }
 0x19e   : > { %v739_v30 = vadd.f32 %v738_v20, %v2275_v47  ;;  %v1053_v20 = vld [vmem:[%s2741_s5 + $0x80] sm:$0xff] }
 0x19f   : > { %v2277_v48 = vpop.f32.mrf.mxu0  ;;  %v740_v22 = vpop.f32.mrf.mxu1 }
 0x1a0   : > { %v741_v33 = vadd.f32 %v740_v22, %v2277_v48 }
 0x1a1   : > { %v2279_v49 = vpop.f32.mrf.mxu0 }
 0x1a2   : > { %v744_v24 = vpop.f32.mrf.mxu1 }
 0x1a3   : > { %v2281_v50 = vpop.f32.mrf.mxu0  ;;  %v745_v37 = vadd.f32 %v744_v24, %v2279_v49 }
 0x1a4   : > { %v746_v28 = vpop.f32.mrf.mxu1 }
 0x1a5   : > { %v747_v41 = vadd.f32 %v746_v28, %v2281_v50  ;;  %v961_v50 = vld [vmem:[%s2740_s4] sm:$0xff] }
 0x1a7   : > { %v2007_v51 = vpop.f32.mrf.mxu0 }
 0x1a9   : > { %v824_v53 = vpop.f32.mrf.mxu0 }
 0x1aa   : > { %1767 = vmatmul.mubr.msk.f32.vlgmr.msra.gmra.mxu1 %vm380_vm0, %v824_v53  ;;  %v1770_v53 = vld [vmem:[%s2740_s4 + $0x8] sm:$0xff] }
 0x1ab   : > { %926 = vmatprep.mubr.f32.mxu1 %v2026_v29  ;;  %1865 = vmatpush3.msra.mxu1 %v1787_v52 }
 0x1ac   : > { %1866 = vmatprep.subr.mxu1 %v1802_v54  ;;  %v1068_v54 = vld [vmem:[%s2741_s5 + $0xf8] sm:$0xff] }
 0x1ad   : > { %1867 = vmatpush3.msra.mxu1 %v1786_v55  ;;  %v1052_v55 = vld [vmem:[%s2741_s5 + $0x78] sm:$0xff] }
 0x1ae   : > { %1768 = vmatmul.mubr.msk.f32.gmra.mxu1 %vm380_vm0, %v2007_v51  ;;  %1868 = vmatprep.subr.mxu1 %v1801_v56  ;;  %v1067_v56 = vld [vmem:[%s2741_s5 + $0xf0] sm:$0xff] }
 0x1af   : > { %1869 = vmatpush3.msra.mxu1 %v1785_v57  ;;  %v1051_v57 = vld [vmem:[%s2741_s5 + $0x70] sm:$0xff] }
 0x1b0   : > { %1870 = vmatprep.subr.mxu1 %v1800_v58  ;;  %v1066_v58 = vld [vmem:[%s2741_s5 + $0xe8] sm:$0xff] }
 0x1b1   : > { %1871 = vmatpush3.msra.mxu1 %v1784_v59  ;;  %v1050_v59 = vld [vmem:[%s2741_s5 + $0x68] sm:$0xff] }
 0x1b2   : > { %1872 = vmatprep.subr.mxu1 %v1799_v60  ;;  %v1065_v60 = vld [vmem:[%s2741_s5 + $0xe0] sm:$0xff] }
 0x1b3   : > { %1873 = vmatpush3.msra.mxu1 %v1783_v61  ;;  %v1049_v61 = vld [vmem:[%s2741_s5 + $0x60] sm:$0xff] }
 0x1b4   : > { %1874 = vmatprep.subr.mxu1 %v1798_v62  ;;  %v1064_v62 = vld [vmem:[%s2741_s5 + $0xd8] sm:$0xff] }
 0x1b5   : > { %1875 = vmatpush3.msra.mxu1 %v1782_v63  ;;  %v1048_v63 = vld [vmem:[%s2741_s5 + $0x58] sm:$0xff] }
 0x1b6   : > { %1876 = vmatprep.subr.mxu1 %v1797_v0  ;;  %v1063_v0 = vld [vmem:[%s2741_s5 + $0xd0] sm:$0xff] }
 0x1b7   : > { %1877 = vmatpush3.msra.mxu1 %v1781_v1  ;;  %v1047_v1 = vld [vmem:[%s2741_s5 + $0x50] sm:$0xff] }
 0x1b8   : > { %1878 = vmatprep.subr.mxu1 %v1796_v2  ;;  %v1062_v2 = vld [vmem:[%s2741_s5 + $0xc8] sm:$0xff] }
 0x1b9   : > { %1879 = vmatpush3.msra.mxu1 %v1780_v3  ;;  %v1046_v3 = vld [vmem:[%s2741_s5 + $0x48] sm:$0xff] }
 0x1ba   : > { %1880 = vmatprep.subr.mxu1 %v1795_v4  ;;  %v1061_v4 = vld [vmem:[%s2741_s5 + $0xc0] sm:$0xff] }
 0x1bb   : > { %1881 = vmatpush3.msra.mxu1 %v1779_v5  ;;  %v1045_v5 = vld [vmem:[%s2741_s5 + $0x40] sm:$0xff] }
 0x1bc   : > { %1882 = vmatprep.subr.mxu1 %v1794_v6  ;;  %v1060_v6 = vld [vmem:[%s2741_s5 + $0xb8] sm:$0xff] }
 0x1bd   : > { %1883 = vmatpush3.msra.mxu1 %v1778_v7  ;;  %v1044_v7 = vld [vmem:[%s2741_s5 + $0x38] sm:$0xff] }
 0x1be   : > { %1884 = vmatprep.subr.mxu1 %v1793_v8  ;;  %v1059_v8 = vld [vmem:[%s2741_s5 + $0xb0] sm:$0xff] }
 0x1bf   : > { %1885 = vmatpush3.msra.mxu1 %v1777_v9  ;;  %v1043_v9 = vld [vmem:[%s2741_s5 + $0x30] sm:$0xff] }
 0x1c0   : > { %1886 = vmatprep.subr.mxu1 %v1792_v10  ;;  %v1058_v10 = vld [vmem:[%s2741_s5 + $0xa8] sm:$0xff] }
 0x1c1   : > { %1887 = vmatpush3.msra.mxu1 %v1776_v11  ;;  %v1042_v11 = vld [vmem:[%s2741_s5 + $0x28] sm:$0xff] }
 0x1c2   : > { %1888 = vmatprep.subr.mxu1 %v1791_v12  ;;  %v1057_v12 = vld [vmem:[%s2741_s5 + $0xa0] sm:$0xff] }
 0x1c3   : > { %1889 = vmatpush3.msra.mxu1 %v1775_v13  ;;  %v1041_v13 = vld [vmem:[%s2741_s5 + $0x20] sm:$0xff] }
 0x1c4   : > { %1890 = vmatprep.subr.mxu1 %v1790_v14  ;;  %v1056_v14 = vld [vmem:[%s2741_s5 + $0x98] sm:$0xff] }
 0x1c5   : > { %1891 = vmatpush3.msra.mxu1 %v1774_v15  ;;  %v1040_v15 = vld [vmem:[%s2741_s5 + $0x18] sm:$0xff] }
 0x1c6   : > { %1892 = vmatprep.subr.mxu1 %v1789_v16  ;;  %v1055_v16 = vld [vmem:[%s2741_s5 + $0x90] sm:$0xff] }
 0x1c7   : > { %1893 = vmatpush3.msra.mxu1 %v1773_v17  ;;  %v1039_v17 = vld [vmem:[%s2741_s5 + $0x10] sm:$0xff] }
 0x1c8   : > { %1894 = vmatprep.subr.mxu1 %v1788_v18  ;;  %v1054_v18 = vld [vmem:[%s2741_s5 + $0x88] sm:$0xff] }
 0x1c9   : > { %1895 = vmatpush3.msra.mxu1 %v1772_v19  ;;  %v1038_v19 = vld [vmem:[%s2741_s5 + $0x8] sm:$0xff] }
 0x26a   : > { %v922_v32 = vpop.f32.mrf.mxu1 }
 0x26b   : > { %v933_v34 = vadd.f32 %v922_v32, %v739_v30  ;;  %v1804_v30 = vld [vmem:[%s2740_s4 + $0x10] sm:$0xff]  ;;  %v1821_v32 = vld [vmem:[%s2741_s5 + $0x278] sm:$0xff] }
 0x26c   : > { %v924_v36 = vpop.f32.mrf.mxu1 }
 0x26d   : > { %v949_v38 = vadd.f32 %v942_v31, %v933_v34  ;;  %v934_v39 = vadd.f32 %v924_v36, %v741_v33  ;;  %v1820_v33 = vld [vmem:[%s2741_s5 + $0x270] sm:$0xff]  ;;  %v1835_v34 = vld [vmem:[%s2741_s5 + $0x2e8] sm:$0xff]  ;;  %v1834_v36 = vld [vmem:[%s2741_s5 + $0x2e0] sm:$0xff] }
 0x26e   : > { %v928_v40 = vpop.f32.mrf.mxu1 }
 0x26f   : > { %v2398_v42 = vmax.f32 %v949_v38, 0.0  ;;  %v950_v43 = vadd.f32 %v946_v35, %v934_v39  ;;  %v935_v44 = vadd.f32 %v928_v40, %v745_v37  ;;  %v1818_v37 = vld [vmem:[%s2741_s5 + $0x260] sm:$0xff]  ;;  %v1833_v38 = vld [vmem:[%s2741_s5 + $0x2d8] sm:$0xff]  ;;  %v1832_v40 = vld [vmem:[%s2741_s5 + $0x2d0] sm:$0xff] }
 0x270   : > { %v930_v45 = vpop.f32.mrf.mxu1  ;;  %v1817_v39 = vld [vmem:[%s2741_s5 + $0x258] sm:$0xff] }
 0x271   : > { %957 = vst [vmem:[%s367_s16] sm:$0xff] %v2398_v42  ;;  %v2401_v46 = vmax.f32 %v950_v43, 0.0  ;;  %v951_v47 = vadd.f32 %v942_v31, %v935_v44  ;;  %v936_v48 = vadd.f32 %v930_v45, %v747_v41  ;;  %v1837_v31 = vld [vmem:[%s2741_s5 + $0x2f8] sm:$0xff]  ;;  %v1816_v41 = vld [vmem:[%s2741_s5 + $0x250] sm:$0xff]  ;;  %v1815_v43 = vld [vmem:[%s2741_s5 + $0x248] sm:$0xff] }
 0x272   : > { %v1830_v44 = vld [vmem:[%s2741_s5 + $0x2c0] sm:$0xff] }
 0x273   : > { %958 = vst [vmem:[%s367_s16 + $0x8] sm:$0xff] %v2401_v46  ;;  %v2404_v49 = vmax.f32 %v951_v47, 0.0  ;;  %v952_v51 = vadd.f32 %v946_v35, %v936_v48  ;;  %v1819_v35 = vld [vmem:[%s2741_s5 + $0x268] sm:$0xff]  ;;  %v1814_v45 = vld [vmem:[%s2741_s5 + $0x240] sm:$0xff]  ;;  %v1813_v47 = vld [vmem:[%s2741_s5 + $0x238] sm:$0xff] }
 0x274   : > { %v1828_v48 = vld [vmem:[%s2741_s5 + $0x2b0] sm:$0xff] }
 0x275   : > { %959 = vst [vmem:[%s367_s16 + $0x10] sm:$0xff] %v2404_v49  ;;  %v956_v52 = vmax.f32 %v952_v51, 0.0  ;;  %v1827_v51 = vld [vmem:[%s2741_s5 + $0x2a8] sm:$0xff] }
 0x277   : > { %960 = vst [vmem:[%s367_s16 + $0x18] sm:$0xff] %v956_v52  ;;  %994 = vmatprep.subr.mxu0 %v956_v52  ;;  %1351 = vmatprep.subr.mxu1 %v956_v52 }
 0x278   : > { %995 = vmatpush1.msra.mxu0 %v2404_v49 }
 0x279   : > { %996 = vmatprep.subr.mxu0 %v2401_v46 }
 0x27a   : > { %997 = vmatpush1.msra.mxu0 %v2398_v42 }
 0x27b   : > { %1769 = vmatmul.mubr.msk.f32.vlgmr.msra.gmra.mxu0 %vm962_vm2, %v961_v50  ;;  %1102 = vmatprep.subr.mxu0 %v956_v52  ;;  %v1811_v52 = vld [vmem:[%s2741_s5 + $0x228] sm:$0xff]  ;;  %v1826_v50 = vld [vmem:[%s2741_s5 + $0x2a0] sm:$0xff] }
 0x27c   : > { %1103 = vmatpush1.msra.mxu0 %v2404_v49  ;;  %1138 = vmatprep.mubr.f32.mxu0 %v2026_v29 }
 0x27d   : > { %1104 = vmatprep.subr.mxu0 %v2401_v46 }
 0x27e   : > { %1105 = vmatpush1.msra.mxu0 %v2398_v42 }
 0x27f   : > { %1771 = vmatmul.mubr.msk.f32.vlgmr.msra.gmra.mxu0 %vm962_vm2, %v1770_v53  ;;  %1899 = vmatprep.subr.mxu0 %v1068_v54  ;;  %v1810_v53 = vld [vmem:[%s2741_s5 + $0x220] sm:$0xff]  ;;  %v1825_v54 = vld [vmem:[%s2741_s5 + $0x298] sm:$0xff] }
 0x280   : > { %1900 = vmatpush3.msra.mxu0 %v1052_v55  ;;  %v1809_v55 = vld [vmem:[%s2741_s5 + $0x218] sm:$0xff] }
 0x281   : > { %1901 = vmatprep.subr.mxu0 %v1067_v56  ;;  %v1824_v56 = vld [vmem:[%s2741_s5 + $0x290] sm:$0xff] }
 0x282   : > { %1902 = vmatpush3.msra.mxu0 %v1051_v57  ;;  %v1808_v57 = vld [vmem:[%s2741_s5 + $0x210] sm:$0xff] }
 0x283   : > { %1903 = vmatprep.subr.mxu0 %v1066_v58  ;;  %v1823_v58 = vld [vmem:[%s2741_s5 + $0x288] sm:$0xff] }
 0x284   : > { %1904 = vmatpush3.msra.mxu0 %v1050_v59  ;;  %v1807_v59 = vld [vmem:[%s2741_s5 + $0x208] sm:$0xff] }
 0x285   : > { %1905 = vmatprep.subr.mxu0 %v1065_v60  ;;  %v1822_v60 = vld [vmem:[%s2741_s5 + $0x280] sm:$0xff] }
 0x286   : > { %1906 = vmatpush3.msra.mxu0 %v1049_v61  ;;  %v1806_v61 = vld [vmem:[%s2741_s5 + $0x200] sm:$0xff] }
 0x287   : > { %1907 = vmatprep.subr.mxu0 %v1064_v62  ;;  %v1538_v62 = vld [vmem:[%s2743_s7 + $0xf8] sm:$0xff] }
 0x288   : > { %1908 = vmatpush3.msra.mxu0 %v1048_v63  ;;  %v1537_v63 = vld [vmem:[%s2743_s7 + $0xf0] sm:$0xff] }
 0x289   : > { %1909 = vmatprep.subr.mxu0 %v1063_v0  ;;  %v1536_v0 = vld [vmem:[%s2743_s7 + $0xe8] sm:$0xff] }
 0x28a   : > { %1910 = vmatpush3.msra.mxu0 %v1047_v1  ;;  %v1535_v1 = vld [vmem:[%s2743_s7 + $0xe0] sm:$0xff] }
 0x28b   : > { %1911 = vmatprep.subr.mxu0 %v1062_v2  ;;  %v1534_v2 = vld [vmem:[%s2743_s7 + $0xd8] sm:$0xff] }
 0x28c   : > { %1912 = vmatpush3.msra.mxu0 %v1046_v3  ;;  %v1533_v3 = vld [vmem:[%s2743_s7 + $0xd0] sm:$0xff] }
 0x28d   : > { %1913 = vmatprep.subr.mxu0 %v1061_v4  ;;  %v1532_v4 = vld [vmem:[%s2743_s7 + $0xc8] sm:$0xff] }
 0x28e   : > { %1914 = vmatpush3.msra.mxu0 %v1045_v5  ;;  %v1531_v5 = vld [vmem:[%s2743_s7 + $0xc0] sm:$0xff] }
 0x28f   : > { %1915 = vmatprep.subr.mxu0 %v1060_v6  ;;  %v1530_v6 = vld [vmem:[%s2743_s7 + $0xb8] sm:$0xff] }
 0x290   : > { %1916 = vmatpush3.msra.mxu0 %v1044_v7  ;;  %v1529_v7 = vld [vmem:[%s2743_s7 + $0xb0] sm:$0xff] }
 0x291   : > { %1917 = vmatprep.subr.mxu0 %v1059_v8  ;;  %v1528_v8 = vld [vmem:[%s2743_s7 + $0xa8] sm:$0xff] }
 0x292   : > { %1918 = vmatpush3.msra.mxu0 %v1043_v9  ;;  %v1527_v9 = vld [vmem:[%s2743_s7 + $0xa0] sm:$0xff] }
 0x293   : > { %1919 = vmatprep.subr.mxu0 %v1058_v10  ;;  %v1526_v10 = vld [vmem:[%s2743_s7 + $0x98] sm:$0xff] }
 0x294   : > { %1920 = vmatpush3.msra.mxu0 %v1042_v11  ;;  %v1525_v11 = vld [vmem:[%s2743_s7 + $0x90] sm:$0xff] }
 0x295   : > { %1921 = vmatprep.subr.mxu0 %v1057_v12  ;;  %v1524_v12 = vld [vmem:[%s2743_s7 + $0x88] sm:$0xff] }
 0x296   : > { %1922 = vmatpush3.msra.mxu0 %v1041_v13  ;;  %v1523_v13 = vld [vmem:[%s2743_s7 + $0x80] sm:$0xff] }
 0x297   : > { %1923 = vmatprep.subr.mxu0 %v1056_v14  ;;  %v1522_v14 = vld [vmem:[%s2743_s7 + $0x78] sm:$0xff] }
 0x298   : > { %1924 = vmatpush3.msra.mxu0 %v1040_v15  ;;  %v1521_v15 = vld [vmem:[%s2743_s7 + $0x70] sm:$0xff] }
 0x299   : > { %1925 = vmatprep.subr.mxu0 %v1055_v16  ;;  %v1520_v16 = vld [vmem:[%s2743_s7 + $0x68] sm:$0xff] }
 0x29a   : > { %1926 = vmatpush3.msra.mxu0 %v1039_v17  ;;  %v1519_v17 = vld [vmem:[%s2743_s7 + $0x60] sm:$0xff] }
 0x29b   : > { %1927 = vmatprep.subr.mxu0 %v1054_v18  ;;  %v1518_v18 = vld [vmem:[%s2743_s7 + $0x58] sm:$0xff] }
 0x29c   : > { %1928 = vmatpush3.msra.mxu0 %v1038_v19 }
 0x29d   : > { %1929 = vmatprep.subr.mxu0 %v1053_v20 }
 0x29e   : > { %1930 = vmatpush3.msra.mxu0 %v1037_v21 }
 0x29f   : > { %1551 = vmatprep.subr.mxu0 %v1538_v62 }
 0x33b   : > { %v1032_v22 = vpop.f32.mrf.mxu0 }
 0x33d   : > { %v1034_v24 = vpop.f32.mrf.mxu0 }
 0x33e   : > { %1312 = vmatprep.mubr.f32.mxu0 %v1034_v24 }
 0x33f   : > { %v1140_v26 = vpop.f32.mrf.mxu0  ;;  %1313 = vmatmul.mubr.f32.vlgmr.msra.gmra.mxu0 %v1032_v22 }
 0x340   : > { %1615 = vmatprep.mubr.f32.mxu0 %v2026_v29  ;;  %1552 = vmatpush1.msra.mxu0 %v1537_v63 }
 0x341   : > { %v1142_v28 = vpop.f32.mrf.mxu0  ;;  %1553 = vmatprep.subr.mxu0 %v1536_v0 }
 0x342   : > { %1242 = vmatprep.mubr.f32.mxu1 %v1142_v28  ;;  %1554 = vmatpush1.msra.mxu0 %v1535_v1  ;;  %v1516_v28 = vld [vmem:[%s2743_s7 + $0x48] sm:$0xff] }
 0x343   : > { %1243 = vmatmul.mubr.f32.vlgmr.msra.gmra.mxu1 %v1140_v26  ;;  %1555 = vmatprep.subr.mxu0 %v1534_v2  ;;  %v1517_v26 = vld [vmem:[%s2743_s7 + $0x50] sm:$0xff] }
 0x344   : > { %1352 = vmatpush1.msra.mxu1 %v2404_v49  ;;  %1387 = vmatprep.mubr.f32.mxu1 %v2026_v29  ;;  %v1836_v29 = vld [vmem:[%s2741_s5 + $0x2f0] sm:$0xff] }
 0x345   : > { %1353 = vmatprep.subr.mxu1 %v2401_v46  ;;  %v1829_v46 = vld [vmem:[%s2741_s5 + $0x2b8] sm:$0xff]  ;;  %v1812_v49 = vld [vmem:[%s2741_s5 + $0x230] sm:$0xff]  ;;  %1556 = vmatpush1.msra.mxu0 %v1533_v3 }
 0x346   : > { %1354 = vmatpush1.msra.mxu1 %v2398_v42  ;;  %v1831_v42 = vld [vmem:[%s2741_s5 + $0x2c8] sm:$0xff]  ;;  %1557 = vmatprep.subr.mxu0 %v1532_v4 }
 0x347   : > { %1805 = vmatmul.mubr.msk.f32.vlgmr.msra.gmra.mxu1 %vm962_vm2, %v1804_v30  ;;  %1934 = vmatprep.subr.mxu1 %v1837_v31  ;;  %v1515_v30 = vld [vmem:[%s2743_s7 + $0x40] sm:$0xff]  ;;  %v1514_v31 = vld [vmem:[%s2743_s7 + $0x38] sm:$0xff] }
 0x348   : > { %1935 = vmatpush3.msra.mxu1 %v1821_v32  ;;  %1558 = vmatpush1.msra.mxu0 %v1531_v5  ;;  %v1513_v32 = vld [vmem:[%s2743_s7 + $0x30] sm:$0xff] }
 0x349   : > { %1936 = vmatprep.subr.mxu1 %v1836_v29  ;;  %1559 = vmatprep.subr.mxu0 %v1530_v6  ;;  %v1512_v29 = vld [vmem:[%s2743_s7 + $0x28] sm:$0xff] }
 0x34a   : > { %1937 = vmatpush3.msra.mxu1 %v1820_v33  ;;  %1560 = vmatpush1.msra.mxu0 %v1529_v7  ;;  %v1511_v33 = vld [vmem:[%s2743_s7 + $0x20] sm:$0xff] }
 0x34b   : > { %1938 = vmatprep.subr.mxu1 %v1835_v34  ;;  %1561 = vmatprep.subr.mxu0 %v1528_v8  ;;  %v1510_v34 = vld [vmem:[%s2743_s7 + $0x18] sm:$0xff] }
 0x34c   : > { %1939 = vmatpush3.msra.mxu1 %v1819_v35  ;;  %1562 = vmatpush1.msra.mxu0 %v1527_v9  ;;  %v1509_v35 = vld [vmem:[%s2743_s7 + $0x10] sm:$0xff] }
 0x34d   : > { %1940 = vmatprep.subr.mxu1 %v1834_v36  ;;  %1563 = vmatprep.subr.mxu0 %v1526_v10  ;;  %v1508_v36 = vld [vmem:[%s2743_s7 + $0x8] sm:$0xff] }
 0x34e   : > { %1941 = vmatpush3.msra.mxu1 %v1818_v37  ;;  %1564 = vmatpush1.msra.mxu0 %v1525_v11  ;;  %v1507_v37 = vld [vmem:[%s2743_s7] sm:$0xff] }
 0x34f   : > { %1942 = vmatprep.subr.mxu1 %v1833_v38  ;;  %1565 = vmatprep.subr.mxu0 %v1524_v12 }
 0x350   : > { %1943 = vmatpush3.msra.mxu1 %v1817_v39  ;;  %1566 = vmatpush1.msra.mxu0 %v1523_v13 }
 0x351   : > { %1944 = vmatprep.subr.mxu1 %v1832_v40  ;;  %1567 = vmatprep.subr.mxu0 %v1522_v14 }
 0x352   : > { %1945 = vmatpush3.msra.mxu1 %v1816_v41  ;;  %1568 = vmatpush1.msra.mxu0 %v1521_v15 }
 0x353   : > { %1946 = vmatprep.subr.mxu1 %v1831_v42  ;;  %1569 = vmatprep.subr.mxu0 %v1520_v16 }
 0x354   : > { %1947 = vmatpush3.msra.mxu1 %v1815_v43  ;;  %1570 = vmatpush1.msra.mxu0 %v1519_v17 }
 0x355   : > { %1948 = vmatprep.subr.mxu1 %v1830_v44  ;;  %1571 = vmatprep.subr.mxu0 %v1518_v18 }
 0x356   : > { %1949 = vmatpush3.msra.mxu1 %v1814_v45  ;;  %1572 = vmatpush1.msra.mxu0 %v1517_v26  ;;  %v1838_v45 = vld [vmem:[%s2742_s6] ss:$0 sm:$0xff] }
 0x357   : > { %1950 = vmatprep.subr.mxu1 %v1829_v46  ;;  %1573 = vmatprep.subr.mxu0 %v1516_v28 }
 0x358   : > { %1951 = vmatpush3.msra.mxu1 %v1813_v47  ;;  %1574 = vmatpush1.msra.mxu0 %v1515_v30 }
 0x359   : > { %1952 = vmatprep.subr.mxu1 %v1828_v48  ;;  %1575 = vmatprep.subr.mxu0 %v1514_v31 }
 0x35a   : > { %1953 = vmatpush3.msra.mxu1 %v1812_v49  ;;  %1576 = vmatpush1.msra.mxu0 %v1513_v32  ;;  %v1539_v49 = vld [vmem:[%s2744_s8] sm:$0x3] }
 0x35b   : > { %1954 = vmatprep.subr.mxu1 %v1827_v51  ;;  %1577 = vmatprep.subr.mxu0 %v1512_v29  ;;  %v1544_v51 = vrot.slane %v1539_v49, %v941_v25 }
 0x35c   : > { %1955 = vmatpush3.msra.mxu1 %v1811_v52  ;;  %1578 = vmatpush1.msra.mxu0 %v1511_v33  ;;  %v1548_v52 = vrot.slane %v1539_v49, %v945_v27 }
 0x35d   : > { %1956 = vmatprep.subr.mxu1 %v1826_v50  ;;  %1579 = vmatprep.subr.mxu0 %v1510_v34 }
 0x35e   : > { %1957 = vmatpush3.msra.mxu1 %v1810_v53  ;;  %1580 = vmatpush1.msra.mxu0 %v1509_v35 }
 0x35f   : > { %1958 = vmatprep.subr.mxu1 %v1825_v54  ;;  %1581 = vmatprep.subr.mxu0 %v1508_v36 }
 0x360   : > { %1959 = vmatpush3.msra.mxu1 %v1809_v55  ;;  %1582 = vmatpush1.msra.mxu0 %v1507_v37 }
 0x361   : > { %1960 = vmatprep.subr.mxu1 %v1824_v56 }
 0x362   : > { %1961 = vmatpush3.msra.mxu1 %v1808_v57 }
 0x363   : > { %1962 = vmatprep.subr.mxu1 %v1823_v58 }
 0x364   : > { %1963 = vmatpush3.msra.mxu1 %v1807_v59 }
 0x365   : > { %1964 = vmatprep.subr.mxu1 %v1822_v60 }
 0x366   : > { %1965 = vmatpush3.msra.mxu1 %v1806_v61 }
 0x3ff   : > { %v1931_v38 = vpop.f32.mrf.mxu0 }
 0x401   : > { %v1932_v39 = vpop.f32.mrf.mxu0 }
 0x402   : > { %v1933_v41 = vadd.f32 %v1932_v39, %v1931_v38 }
 0x403   : > { %v1896_v19 = vpop.f32.mrf.mxu1 }
 0x405   : > { %v1897_v20 = vpop.f32.mrf.mxu1 }
 0x406   : > { %v1898_v21 = vadd.f32 %v1897_v20, %v1896_v19 }
 0x407   : > { %v1389_v22 = vpop.f32.mrf.mxu1 }
 0x408   : > { %v1315_v43 = vadd.f32 %v1933_v41, %v1898_v21 }
 0x409   : > { %v1391_v24 = vpop.f32.mrf.mxu1 }
 0x40a   : > { %1491 = vmatprep.mubr.f32.mxu1 %v1391_v24 }
 0x40b   : > { %1492 = vmatmul.mubr.f32.vlgmr.msra.gmra.mxu1 %v1389_v22 }
 0x4cb   : > { %v1966_v40 = vpop.f32.mrf.mxu1 }
 0x4cd   : > { %v1967_v42 = vpop.f32.mrf.mxu1 }
 0x4ce   : > { %v1968_v44 = vadd.f32 %v1967_v42, %v1966_v40 }
 0x4d0   : > { %v1497_v46 = vadd.f32 %v1968_v44, %v1315_v43 }
 0x4d2   : > { %v1505_v47 = vadd.f32 %v1838_v45, %v1497_v46 }
 0x4d4   : > { %v1506_v48 = vmax.f32 %v1505_v47, 0.0 }
 0x4d6   : > { %1616 = vmatmul.mubr.f32.vlgmr.msra.gmra.mxu0 %v1506_v48 }
 0x596   : > { %v1617_v50 = vpop.f32.mrf.mxu0 }
 0x597   : > { %v1618_v53 = vadd.f32 %v1617_v50, %v1544_v51 }
 0x598   : > { %v1619_v54 = vpop.f32.mrf.mxu0 }
 0x599   : > { %v1622_v55 = vmax.f32 %v1618_v53, 0.0  ;;  %v1620_v56 = vadd.f32 %v1619_v54, %v1548_v52 }
 0x59b   : > { %1624 = vst [vmem:[%s372_s24] sm:$0xff] %v1622_v55  ;;  %v1623_v57 = vmax.f32 %v1620_v56, 0.0 }
 0x59d   : > { %1625 = vst [vmem:[%s372_s24 + $0x8] sm:$0xff] %v1623_v57 }
 0x59e PF: > { %s21_s13 = sadd.s32 1, %s2024_s13  }
 0x59f   : > { %p18_p4 = scmp.ge.s32.totalorder %s21_s13, 4  }
 0x5a1   :  { %20 = sbr.rel (!%p18_p4) target bundleno = 1 (0x1), region = 106 }

</bundles_post_ra>
